<compile_context>
chip_gen: v7x
topology: tpu7x:2x2x1
jax: 0.10.0
libtpu: 0.0.40
codegen_flags: <defaults>
</compile_context>

<pallas_src>
import math
import re
from typing import Dict, List

import jax
import jax.numpy as jnp
from jax.experimental import pallas as pl
from jax.experimental.pallas import tpu as pltpu


def _round_up(n: int, m: int) -> int:
    return -(-n // m) * m


def _fwe_kernel(x_ref, w_ref, b_ref, cls_ref, o_ref):
    # x_ref:   (TB*T, F)     flattened batch tile of day features
    # w_ref:   (F, H)        effective projection weight (feature scale folded in)
    # b_ref:   (1, H)        projection bias
    # cls_ref: (1, H)        CLS token embedding
    # o_ref:   (TB, T+1, H)  output tile; index 0 of the middle axis is CLS
    tb, tp1, h = o_ref.shape
    t = tp1 - 1

    # Single MXU matmul for the whole batch tile (no input reshape needed).
    day = jnp.dot(x_ref[...], w_ref[...],
                  preferred_element_type=jnp.float32,
                  precision=jax.lax.Precision.HIGHEST) + b_ref[...]      # (TB*T, H)

    # Two direct stores, no concatenate.  The reshape only re-expands the
    # leading dim (layout-preserving when T % 8 == 0).
    o_ref[:, pl.ds(1, t), :] = day.reshape(tb, t, h).astype(o_ref.dtype)
    o_ref[:, 0, :] = jnp.broadcast_to(cls_ref[...], (tb, h)).astype(o_ref.dtype)


def featured_weighted_embedding(x, feature_weights, w_proj, b_proj, cls_token,
                                *, tb_max: int = 1024):
    """x: (B, T, F) float32 -> (B, T+1, H) float32."""
    B, T, F = x.shape
    Fw, H = w_proj.shape
    assert Fw == F, f"Expected input feature dim {Fw}, got {F}"

    # Fold the per-feature scale into the projection weight (one-time (F,H) mul).
    w_eff = (feature_weights[:, None] * w_proj).astype(jnp.float32)       # (F, H)
    b2 = b_proj.reshape(1, H).astype(jnp.float32)
    cls2 = cls_token.reshape(1, H).astype(jnp.float32)
    x_flat = x.reshape(B * T, F).astype(jnp.float32)   # free HBM metadata reshape

    # ---- VMEM-aware batch-tile selection (no padding of x) -----------------
    itemsize = 4
    F_pad = _round_up(F, 128)
    H_pad = _round_up(H, 128)
    Tp1_pad = _round_up(T + 1, 8)
    # Per batch-row VMEM: double-buffered x and out blocks + f32 intermediate.
    bytes_per_b = itemsize * (2 * T * F_pad + 2 * Tp1_pad * H_pad + T * H_pad)
    param_bytes = itemsize * (_round_up(F, 8) * H_pad + 2 * 8 * H_pad)

    try:
        vmem_phys = int(pltpu.get_tpu_info().vmem_capacity_bytes)
    except Exception:
        vmem_phys = 64 << 20            # conservative: v7x has 64 MiB per core
    budget = min(vmem_phys * 5 // 8, 80 << 20)   # leave compiler headroom

    TB = min(tb_max, B, max(8, budget // max(bytes_per_b, 1)))
    # v7x megacore: ensure >= 2 grid steps when B is big enough to matter.
    if B >= 16:
        TB = min(TB, _round_up(pl.cdiv(B, 2), 8))
    # (8,128) rule: the (TB*T, F) block's sublane dim must be a multiple of 8
    # unless it equals the full array extent (single block case below).
    step = 8 // math.gcd(T, 8)
    TB = _round_up(max(TB, 1), step)
    if TB >= B:
        TB = B                          # single full-extent block, always legal
    nb = pl.cdiv(B, TB)

    vmem_limit = int(min(max(TB * bytes_per_b + param_bytes + (4 << 20), 32 << 20),
                         vmem_phys - (4 << 20)))

    cost = pl.CostEstimate(
        flops=2 * B * T * F * H,
        transcendentals=0,
        bytes_accessed=itemsize * (B * T * F + B * (T + 1) * H + F * H + 2 * H),
    )

    out = pl.pallas_call(
        _fwe_kernel,
        out_shape=jax.ShapeDtypeStruct((B, T + 1, H), jnp.float32),
        grid_spec=pltpu.PrefetchScalarGridSpec(
            num_scalar_prefetch=0,
            grid=(nb,),
            in_specs=[
                pl.BlockSpec((TB * T, F), lambda i: (i, 0)),     # batch tile of x
                pl.BlockSpec((F, H), lambda i: (0, 0)),          # resident weight
                pl.BlockSpec((1, H), lambda i: (0, 0)),          # resident bias
                pl.BlockSpec((1, H), lambda i: (0, 0)),          # resident CLS
            ],
            out_specs=pl.BlockSpec((TB, T + 1, H), lambda i: (i, 0, 0)),
        ),
        compiler_params=pltpu.CompilerParams(
            dimension_semantics=("parallel",),
            vmem_limit_bytes=vmem_limit),
        cost_estimate=cost,
    )(x_flat, w_eff, b2, cls2)
    return out


def build_params(feature_names: List[str], embed_dim: int,
                 init_weights: Dict[str, float] = None, decay_rate: float = 0.2,
                 key=None):
    """Deterministic parameter construction mirroring the torch __init__."""
    F = len(feature_names)
    weight = jnp.ones((F,), dtype=jnp.float32)
    if init_weights:
        vals = [init_weights.get(name, 1.0) for name in feature_names]
        weight = jnp.asarray(vals, dtype=jnp.float32)
    pattern = re.compile(r"_t-(\d+)$")
    offsets = jnp.asarray(
        [int(m.group(1)) if (m := pattern.search(n)) else 0 for n in feature_names],
        dtype=jnp.float32)
    weight = weight * jnp.exp(-decay_rate * offsets)

    if key is None:
        key = jax.random.PRNGKey(0)
    kw, kb = jax.random.split(key)
    # nn.Linear(F, H): weight (H, F) ~ U(-1/sqrt(F), 1/sqrt(F)); store transposed (F, H).
    bound = 1.0 / jnp.sqrt(jnp.float32(F))
    w_torch = jax.random.uniform(kw, (embed_dim, F), jnp.float32, -bound, bound)
    b_proj = jax.random.uniform(kb, (embed_dim,), jnp.float32, -bound, bound)
    w_proj = w_torch.T                               # (F, H)
    cls_token = jnp.zeros((1, 1, embed_dim), dtype=jnp.float32)
    return weight, w_proj, b_proj, cls_token


def reference(x, feature_weights, w_proj, b_proj, cls_token):
    # Mirrors the PyTorch order of operations: scale, project, prepend CLS.
    weighted = x * feature_weights[None, None, :]
    day = jnp.einsum("btf,fh->bth", weighted, w_proj,
                     precision=jax.lax.Precision.HIGHEST) + b_proj[None, None, :]
    cls = jnp.broadcast_to(cls_token.reshape(1, 1, -1),
                           (x.shape[0], 1, w_proj.shape[1]))
    return jnp.concatenate([cls, day], axis=1)


if __name__ == "__main__":
    B, T, H = 2, 8, 32
    # Feature names: some with temporal offsets "_t-k" to exercise the decay path.
    feature_names = []
    for i in range(14):
        feature_names.append(f"feat{i}")
        feature_names.append(f"feat{i}_t-1")
        feature_names.append(f"feat{i}_t-2")
        feature_names.append(f"feat{i}_t-3")
    F = len(feature_names)  # 56
    init_weights = {"feat0": 2.0, "feat1_t-1": 0.5}

    key = jax.random.PRNGKey(0)
    k_x, k_p = jax.random.split(key)
    x = jax.random.normal(k_x, (B, T, F), dtype=jnp.float32)

    fw, w_proj, b_proj, cls_token = build_params(
        feature_names, H, init_weights=init_weights, decay_rate=0.2, key=k_p)

    out = featured_weighted_embedding(x, fw, w_proj, b_proj, cls_token)
    out = jax.block_until_ready(out)

    ref = reference(x, fw, w_proj, b_proj, cls_token)
    assert out.shape == (B, T + 1, H), out.shape
    assert jnp.allclose(out, ref, atol=1e-5, rtol=1e-5), "mismatch vs reference"
    print("KERNEL_OK")
</pallas_src>

<mosaic_0001>
module attributes {stable_mosaic.version = 11 : i64} {
  func.func @_fwe_kernel(%arg0: i32, %arg1: memref<16x56xf32, #tpu.memory_space<vmem>>, %arg2: memref<56x32xf32, #tpu.memory_space<vmem>>, %arg3: memref<1x32xf32, #tpu.memory_space<vmem>>, %arg4: memref<1x32xf32, #tpu.memory_space<vmem>>, %arg5: memref<2x9x32xf32, #tpu.memory_space<vmem>>) attributes {dimension_semantics = [#tpu.dimension_semantics<parallel>], iteration_bounds = array<i64: 1>, scalar_prefetch = 0 : i64, scratch_operands = 0 : i64, tpu.core_type = #tpu.core_type<tc>, window_params = [{transform_indices = @transform_0, window_bounds = array<i64: 16, 56>}, {pipeline_mode = #tpu.pipeline_mode<synchronous>, transform_indices = @transform_1, window_bounds = array<i64: 56, 32>}, {pipeline_mode = #tpu.pipeline_mode<synchronous>, transform_indices = @transform_2, window_bounds = array<i64: 1, 32>}, {pipeline_mode = #tpu.pipeline_mode<synchronous>, transform_indices = @transform_3, window_bounds = array<i64: 1, 32>}, {transform_indices = @transform_4, window_bounds = array<i64: 2, 9, 32>}]} {
    %c0 = arith.constant 0 : index
    %c0_0 = arith.constant 0 : index
    %0 = vector.load %arg1[%c0, %c0_0] : memref<16x56xf32, #tpu.memory_space<vmem>>, vector<16x56xf32>
    %c0_1 = arith.constant 0 : index
    %c0_2 = arith.constant 0 : index
    %1 = vector.load %arg2[%c0_1, %c0_2] : memref<56x32xf32, #tpu.memory_space<vmem>>, vector<56x32xf32>
    %cst = arith.constant dense<0.000000e+00> : vector<16x32xf32>
    %2 = tpu.matmul %0, %1, %cst {dimension_numbers = #tpu.dot_dimension_numbers<[1], [0], [0], [1], [0, 0, 1, 1], [], []>, precision = #tpu.contract_precision<fp32>} : vector<16x56xf32>, vector<56x32xf32>, vector<16x32xf32> -> vector<16x32xf32>
    %c0_3 = arith.constant 0 : index
    %c0_4 = arith.constant 0 : index
    %3 = vector.load %arg3[%c0_3, %c0_4] : memref<1x32xf32, #tpu.memory_space<vmem>>, vector<1x32xf32>
    %4 = vector.broadcast %3 : vector<1x32xf32> to vector<16x32xf32>
    %5 = arith.addf %2, %4 : vector<16x32xf32>
    %6 = vector.shape_cast %5 : vector<16x32xf32> to vector<2x8x32xf32>
    %c0_5 = arith.constant 0 : index
    %c1 = arith.constant 1 : index
    %c0_6 = arith.constant 0 : index
    %7 = vector.load %arg5[%c0_5, %c1, %c0_6] : memref<2x9x32xf32, #tpu.memory_space<vmem>>, vector<2x8x32xf32>
    tpu.vector_store %arg5[%c0_5, %c1, %c0_6], %6 {strides = array<i32>} : memref<2x9x32xf32, #tpu.memory_space<vmem>>, vector<2x8x32xf32>,
    %c0_7 = arith.constant 0 : index
    %c0_8 = arith.constant 0 : index
    %8 = vector.load %arg4[%c0_7, %c0_8] : memref<1x32xf32, #tpu.memory_space<vmem>>, vector<1x32xf32>
    %9 = vector.shape_cast %8 : vector<1x32xf32> to vector<1x32xf32>
    %10 = vector.broadcast %9 : vector<1x32xf32> to vector<2x32xf32>
    %c0_9 = arith.constant 0 : index
    %c0_10 = arith.constant 0 : index
    %c0_11 = arith.constant 0 : index
    %11 = vector.load %arg5[%c0_9, %c0_10, %c0_11] : memref<2x9x32xf32, #tpu.memory_space<vmem>>, vector<2x1x32xf32>
    %12 = vector.shape_cast %11 : vector<2x1x32xf32> to vector<2x32xf32>
    %13 = vector.shape_cast %10 : vector<2x32xf32> to vector<2x1x32xf32>
    tpu.vector_store %arg5[%c0_9, %c0_10, %c0_11], %13 {strides = array<i32>} : memref<2x9x32xf32, #tpu.memory_space<vmem>>, vector<2x1x32xf32>,
    return
  }
  func.func @transform_0(%arg0: i32) -> (i32, i32) {
    %c0_i32 = arith.constant 0 : i32
    %c0_i32_0 = arith.constant 0 : i32
    return %arg0, %c0_i32 : i32, i32
  }
  func.func @transform_1(%arg0: i32) -> (i32, i32) {
    %c0_i32 = arith.constant 0 : i32
    %c0_i32_0 = arith.constant 0 : i32
    %c0_i32_1 = arith.constant 0 : i32
    return %c0_i32, %c0_i32_0 : i32, i32
  }
  func.func @transform_2(%arg0: i32) -> (i32, i32) {
    %c0_i32 = arith.constant 0 : i32
    %c0_i32_0 = arith.constant 0 : i32
    %c0_i32_1 = arith.constant 0 : i32
    return %c0_i32, %c0_i32_0 : i32, i32
  }
  func.func @transform_3(%arg0: i32) -> (i32, i32) {
    %c0_i32 = arith.constant 0 : i32
    %c0_i32_0 = arith.constant 0 : i32
    %c0_i32_1 = arith.constant 0 : i32
    return %c0_i32, %c0_i32_0 : i32, i32
  }
  func.func @transform_4(%arg0: i32) -> (i32, i32, i32) {
    %c0_i32 = arith.constant 0 : i32
    %c0_i32_0 = arith.constant 0 : i32
    %c0_i32_1 = arith.constant 0 : i32
    return %arg0, %c0_i32, %c0_i32_0 : i32, i32, i32
  }
}

</mosaic_0001>

<bundles_post_ra>
// kernel: tpu_custom_call.1
= control target key start
LH: loop header
LB: loop body
LE: loop exit
PB: predicated region body
PF: predicated region fallthrough
CT: control target
= control target key end

     0   :  { %vm33_vm0 = vcmask 457728   ;;  %vm640_vm1 = vcmask 253952   ;;  %vm607_vm2 = vcmask 261120   ;;  %s1046_s1 = inlined_call_operand.vmem [shape: f32[56,32], index: 1, kind: input, shape index: {}]   ;;  %s1047_s0 = inlined_call_operand.vmem [shape: f32[16,56], index: 0, kind: input, shape index: {}]   ;;  %s1048_s3 = inlined_call_operand.vmem [shape: f32[1,32], index: 3, kind: input, shape index: {}]   ;;  %s1049_s4 = inlined_call_operand.vmem [shape: f32[2,9,32], index: 4, kind: output, shape index: {}]   ;;  %s1050_s2 = inlined_call_operand.vmem [shape: f32[1,32], index: 2, kind: input, shape index: {}]  }
   0x1   :  { %v19_v0 = vld [vmem:[%s1046_s1] sm:$0xff]  ;;  %v20_v1 = vld [vmem:[%s1046_s1 + $0x8] sm:$0xff]  ;;  %v21_v2 = vld [vmem:[%s1046_s1 + $0x10] sm:$0xff] }
   0x2   :  { %v41_v3 = vand.u32 4294901760, %v19_v0  ;;  %v44_v4 = vand.u32 4294901760, %v20_v1  ;;  %v22_v5 = vld [vmem:[%s1046_s1 + $0x18] sm:$0xff]  ;;  %v47_v6 = vand.u32 4294901760, %v21_v2  ;;  %v23_v7 = vld [vmem:[%s1046_s1 + $0x20] sm:$0xff]  ;;  %v24_v8 = vld [vmem:[%s1046_s1 + $0x28] sm:$0xff] }
   0x3   :  { %v50_v9 = vand.u32 4294901760, %v22_v5  ;;  %v53_v10 = vand.u32 4294901760, %v23_v7  ;;  %v56_v11 = vand.u32 4294901760, %v24_v8  ;;  %v17_v12 = vld [vmem:[%s1047_s0] sm:$0xff]  ;;  %v18_v13 = vld [vmem:[%s1047_s0 + $0x8] sm:$0xff]  ;;  %v25_v31 = vld [vmem:[%s1046_s1 + $0x30] sm:$0xff] }
   0x4   :  { %v940_v14 = vpack.c.bf16 %v44_v4, %v41_v3  ;;  %v35_v15 = vsel %vm33_vm0, %v17_v12, 0  ;;  %v38_v16 = vsel %vm33_vm0, %v18_v13, 0  ;;  %v952_v21 = vsub.f32 %v19_v0, %v41_v3 }
   0x5   :  { %v942_v17 = vpack.c.bf16 %v50_v9, %v47_v6  ;;  %v944_v18 = vpack.c.bf16 %v56_v11, %v53_v10  ;;  %v946_v19 = vand.u32 4294901760, %v35_v15  ;;  %v948_v20 = vand.u32 4294901760, %v38_v16 }
   0x6   :  { %806 = vmatprep.subr.bf16.mxu1 %v940_v14  ;;  %842 = vmatprep.subr.bf16.mxu0 %v940_v14  ;;  %v954_v22 = vsub.f32 %v20_v1, %v44_v4  ;;  %v956_v23 = vsub.f32 %v21_v2, %v47_v6  ;;  %v966_v26 = vsub.f32 %v22_v5, %v50_v9  ;;  %v135_v27 = vand.u32 4294901760, %v952_v21 }
   0x7   :  { %808 = vmatpush3.bf16.msra.mxu1 %v940_v14  ;;  %844 = vmatpush3.bf16.msra.mxu0 %v940_v14  ;;  %v961_v24 = vsub.f32 %v35_v15, %v946_v19  ;;  %v964_v25 = vsub.f32 %v38_v16, %v948_v20  ;;  %v973_v30 = vsub.f32 %v23_v7, %v53_v10  ;;  %v993_v42 = vand.u32 4294901760, %v25_v31  ;;  %v648_v10 = vld [vmem:[%s1048_s3] ss:$0 sm:$0xff] }
   0x8   :  { %810 = vmatprep.subr.bf16.mxu1 %v942_v17  ;;  %846 = vmatprep.subr.bf16.mxu0 %v942_v17  ;;  %v142_v28 = vand.u32 4294901760, %v954_v22  ;;  %v149_v29 = vand.u32 4294901760, %v956_v23  ;;  %v156_v34 = vand.u32 4294901760, %v966_v26  ;;  %v136_v35 = vsub.f32 %v952_v21, %v135_v27  ;;  %v647_v15 = vld [vmem:[%s1050_s2] ss:$0 sm:$0xff] }
   0x9   :  { %v114_v32 = vand.u32 4294901760, %v961_v24  ;;  %v124_v33 = vand.u32 4294901760, %v964_v25  ;;  %v983_v37 = vsub.f32 %v24_v8, %v56_v11  ;;  %v163_v41 = vand.u32 4294901760, %v973_v30 }
   0xa   :  { %v143_v36 = vsub.f32 %v954_v22, %v142_v28  ;;  %v150_v39 = vsub.f32 %v956_v23, %v149_v29  ;;  %v157_v40 = vsub.f32 %v966_v26, %v156_v34  ;;  %v137_v43 = vand.u32 4294901760, %v136_v35 }
   0xb   :  { %812 = vmatpush3.bf16.msra.mxu1 %v942_v17  ;;  %848 = vmatpush3.bf16.msra.mxu0 %v942_v17  ;;  %v115_v38 = vsub.f32 %v961_v24, %v114_v32  ;;  %v125_v46 = vsub.f32 %v964_v25, %v124_v33  ;;  %v170_v47 = vand.u32 4294901760, %v983_v37  ;;  %v164_v50 = vsub.f32 %v973_v30, %v163_v41 }
   0xc   :  { %814 = vmatprep.subr.bf16.mxu1 %v944_v18  ;;  %850 = vmatprep.subr.bf16.mxu0 %v944_v18  ;;  %v144_v44 = vand.u32 4294901760, %v143_v36  ;;  %v151_v48 = vand.u32 4294901760, %v150_v39  ;;  %v158_v49 = vand.u32 4294901760, %v157_v40  ;;  %v176_v51 = vsub.f32 %v25_v31, %v993_v42 }
   0xd   :  { %v116_v45 = vand.u32 4294901760, %v115_v38  ;;  %768 = vmatprep.mubr.f32.mxu0 %v114_v32  ;;  %v853_v53 = vpack.c.bf16 %v142_v28, %v135_v27  ;;  %v171_v54 = vsub.f32 %v983_v37, %v170_v47  ;;  %v126_v55 = vand.u32 4294901760, %v125_v46 }
   0xe   :  { %v817_v52 = vpack.c.bf16 %v144_v44, %v137_v43  ;;  %v857_v56 = vpack.c.bf16 %v156_v34, %v149_v29  ;;  %v821_v57 = vpack.c.bf16 %v158_v49, %v151_v48  ;;  %v165_v58 = vand.u32 4294901760, %v164_v50 }
   0xf   :  { %816 = vmatpush3.bf16.msra.mxu1 %v944_v18  ;;  %852 = vmatpush3.bf16.msra.mxu0 %v944_v18  ;;  %v172_v59 = vand.u32 4294901760, %v171_v54  ;;  %v177_v60 = vand.u32 4294901760, %v176_v51  ;;  %v861_v62 = vpack.c.bf16 %v170_v47, %v163_v41  ;;  %v829_v1 = vpack.c.bf16 %v954_v22, %v952_v21 }
  0x10   :  { %715 = vmatprep.subr.mxu1 %v993_v42  ;;  %766 = vmatprep.subr.mxu0 %v993_v42  ;;  %v833_v2 = vpack.c.bf16 %v966_v26, %v956_v23  ;;  %v837_v3 = vpack.c.bf16 %v983_v37, %v973_v30  ;;  %v890_v4 = vmov 1966171168   ;;  %v619_v6 = vlaneseq }
  0x11   :  { %717 = vmatprep.mubr.f32.mxu1 %v116_v45  ;;  %v825_v61 = vpack.c.bf16 %v172_v59, %v165_v58  ;;  %v178_v63 = vsub.f32 %v176_v51, %v177_v60  ;;  %v617_v5 = vunpack.c.l.s4 %v890_v4 }
  0x12   :  { %v620_v8 = vshrl.u32 %v619_v6, 7 }
  0x13   :  { %716 = vmatpush3.msra.mxu1 %v993_v42  ;;  %767 = vmatpush3.msra.mxu0 %v993_v42  ;;  %v179_v0 = vand.u32 4294901760, %v178_v63  ;;  %v618_v7 = vunpack.c.0.s8 %v617_v5 }
  0x14   :  { %818 = vmatprep.subr.bf16.mxu1 %v817_v52  ;;  %854 = vmatprep.subr.bf16.mxu0 %v853_v53 }
  0x15   :  { %718 = vmatmul.mubr.f32.vlgmr.msra.gmra.mrb[0].mxu1 %v126_v55  ;;  %769 = vmatmul.mubr.f32.vlgmr.msra.gmra.mrb[0].mxu0 %v124_v33  ;;  %v621_v9 = vsub.s32 %v618_v7, %v620_v8 }
  0x16   :  { %820 = vmatpush3.bf16.msra.mxu1 %v817_v52  ;;  %856 = vmatpush3.bf16.msra.mxu0 %v853_v53 }
  0x17   :  { %822 = vmatprep.subr.bf16.mxu1 %v821_v57  ;;  %858 = vmatprep.subr.bf16.mxu0 %v857_v56  ;;  %v622_v11 = vrot.slane %v648_v10, %v621_v9 }
  0x18   :  { %734 = vmatprep.mubr.f32.mxu1 %v946_v19  ;;  %785 = vmatprep.mubr.f32.mxu0 %v946_v19 }
  0x19   :  { %v623_v12 = vcombine.high %v622_v11, %v622_v11  ;;  %v630_v13 = vrot.slane %v622_v11, %v621_v9 }
  0x1a   :  { %824 = vmatpush3.bf16.msra.mxu1 %v821_v57  ;;  %860 = vmatpush3.bf16.msra.mxu0 %v857_v56 }
  0x1b   :  { %826 = vmatprep.subr.bf16.mxu1 %v825_v61  ;;  %862 = vmatprep.subr.bf16.mxu0 %v861_v62  ;;  %641 = vst.msk [vmem:[%s1049_s4] sm:$0x1] %vm640_vm1, %v630_v13 }
  0x1e   :  { %828 = vmatpush3.bf16.msra.mxu1 %v825_v61  ;;  %864 = vmatpush3.bf16.msra.mxu0 %v861_v62 }
  0x1f   :  { %732 = vmatprep.subr.mxu1 %v179_v0  ;;  %783 = vmatprep.subr.mxu0 %v177_v60 }
  0x22   :  { %733 = vmatpush3.msra.mxu1 %v179_v0  ;;  %784 = vmatpush3.msra.mxu0 %v177_v60 }
  0x23   :  { %830 = vmatprep.subr.bf16.mxu1 %v829_v1  ;;  %866 = vmatprep.subr.bf16.mxu0 %v940_v14 }
  0x24   :  { %735 = vmatmul.mubr.f32.vlgmr.msra.gmra.mrb[0].mxu1 %v948_v20  ;;  %786 = vmatmul.mubr.f32.vlgmr.msra.gmra.mrb[0].mxu0 %v948_v20 }
  0x25   :  { %832 = vmatpush3.bf16.msra.mxu1 %v829_v1  ;;  %868 = vmatpush3.bf16.msra.mxu0 %v940_v14  ;;  %v637_v14 = vrot.slane %v623_v12, %v621_v9 }
  0x26   :  { %834 = vmatprep.subr.bf16.mxu1 %v833_v2  ;;  %870 = vmatprep.subr.bf16.mxu0 %v942_v17 }
  0x27   :  { %751 = vmatprep.mubr.f32.mxu1 %v961_v24  ;;  %802 = vmatprep.mubr.f32.mxu0 %v946_v19  ;;  %642 = vst.msk [vmem:[%s1049_s4 + $0x10] sm:$0x1] %vm640_vm1, %v637_v14 }
  0x29   :  { %836 = vmatpush3.bf16.msra.mxu1 %v833_v2  ;;  %872 = vmatpush3.bf16.msra.mxu0 %v942_v17 }
  0x2a   :  { %838 = vmatprep.subr.bf16.mxu1 %v837_v3  ;;  %874 = vmatprep.subr.bf16.mxu0 %v944_v18 }
  0x2d   :  { %840 = vmatpush3.bf16.msra.mxu1 %v837_v3  ;;  %876 = vmatpush3.bf16.msra.mxu0 %v944_v18 }
  0x2e   :  { %749 = vmatprep.subr.mxu1 %v176_v51  ;;  %800 = vmatprep.subr.mxu0 %v993_v42 }
  0x31   :  { %750 = vmatpush3.msra.mxu1 %v176_v51  ;;  %801 = vmatpush3.msra.mxu0 %v993_v42 }
  0x32   :  { %752 = vmatmul.mubr.f32.vlgmr.msra.gmra.mrb[0].mxu1 %v964_v25  ;;  %803 = vmatmul.mubr.f32.vlgmr.msra.gmra.mrb[0].mxu0 %v948_v20 }
 0x105   :  { %v753_v16 = vpop.f32.mrb[0].mxu1  ;;  %v804_v17 = vpop.f32.mrb[0].mxu0 }
 0x106   :  { %v877_v18 = vadd.f32 %v753_v16, %v647_v15  ;;  %v326_v19 = vpop.f32.mrb[1].mxu1  ;;  %v597_v20 = vpop.f32.mrb[1].mxu0 }
 0x107   :  { %v879_v21 = vadd.f32 %v647_v15, %v326_v19 }
 0x108   :  { %v878_v22 = vadd.f32 %v877_v18, %v804_v17 }
 0x109   :  { %v880_v23 = vadd.f32 %v879_v21, %v597_v20 }
 0x10a   :  { %609 = vst.msk [vmem:[%s1049_s4 + $0x11] sm:$0xff] %vm607_vm2, %v878_v22 }
 0x10b   :  { %608 = vst.msk [vmem:[%s1049_s4 + $0x1] sm:$0xff] %vm607_vm2, %v880_v23 }

</bundles_post_ra>
